<compile_context>
chip_gen: v6e
topology: v6e:2x2x1
jax: 0.10.0
libtpu: 0.0.40
codegen_flags: <defaults>
</compile_context>

<pallas_src>
import functools

import jax
import jax.numpy as jnp
from jax.experimental import pallas as pl
from jax.experimental.pallas import tpu as pltpu

_LANES = 128
_SUBLANES = 8
_INNER_ROWS = 1024        # rows per in-kernel compute chunk (128 f32 vregs)
_MAX_TILE_ROWS = 16384    # caps the f32 compute footprint per block at 8 MiB


def _ceil_div(a, b):
    return -(-a // b)


def _round_up(a, b):
    return _ceil_div(a, b) * b


def _vmem_capacity_bytes():
    try:
        cap = getattr(pltpu.get_tpu_info(), "vmem_capacity_bytes", None)
        if cap:
            return int(cap)
    except Exception:  # pragma: no cover
        pass
    return 64 * 1024 * 1024  # conservative fallback (v7x per-TC)


def _num_tensorcores():
    # v7x has 2 TensorCores per chip (shard the leading 'parallel' axis across
    # them); v5e/v6e have 1, so the axis collapses and adds no padded work.
    try:
        kind = jax.devices()[0].device_kind.lower()
        if "v7" in kind:
            return 2
    except Exception:  # pragma: no cover
        pass
    return 1


def _focal_loss_kernel(x_ref, t_ref, out_ref, acc_ref, *,
                       alpha, gamma, rows, tile_rows, inner_rows,
                       blocks_per_partial):
    c = pl.program_id(0)            # TensorCore slice (parallel axis)
    i = pl.program_id(1)            # row-block within the slice (arbitrary axis)

    @pl.when(i == 0)
    def _():
        acc_ref[...] = jnp.zeros_like(acc_ref)

    # Unclamped global row offset of this block.  (The input index_map clamps
    # the *fetch* for phantom blocks; masking here uses the unclamped offset so
    # phantom / out-of-range rows contribute exactly zero.)
    row_start = (c * blocks_per_partial + i) * tile_rows
    rows_left = rows - row_start    # valid rows in this block (<= 0 for phantom)

    sub = inner_rows // _SUBLANES
    n_chunks = tile_rows // inner_rows

    def fold(v):
        # (inner_rows, 128) -> (8, 128): pairwise tree of pure VALU adds
        # (slices are aligned to (8, 128) tiles, so no relayout copies).
        parts = [v[k * _SUBLANES:(k + 1) * _SUBLANES, :] for k in range(sub)]
        while len(parts) > 1:
            nxt = [parts[k] + parts[k + 1] for k in range(0, len(parts) - 1, 2)]
            if len(parts) % 2:
                nxt.append(parts[-1])
            parts = nxt
        return parts[0]

    def chunk_body(j, carry):
        r0 = pl.multiple_of(j * inner_rows, inner_rows)
        chunk_valid = rows_left - r0          # valid rows in this chunk

        @pl.when(chunk_valid > 0)             # skip fully-invalid (phantom) chunks
        def _():
            x = x_ref[pl.ds(r0, inner_rows), :].astype(jnp.float32)
            t = t_ref[pl.ds(r0, inner_rows), :].astype(jnp.float32)

            # Stable binary_cross_entropy_with_logits (reduction='none'):
            #   max(x, 0) - x*t + log1p(exp(-|x|))
            e = jnp.exp(-jnp.abs(x))          # shared with the sigmoid below
            ce = jnp.maximum(x, 0.0) - x * t + jnp.log1p(e)

            # Stable sigmoid reusing e; approx reciprocal runs on the EUP slot.
            inv = pl.reciprocal(1.0 + e, approx=True)
            p = jnp.where(x >= 0.0, inv, e * inv)

            # 1 - p_t  ==  p + t - 2*p*t   (folded algebra)
            m = p + t - 2.0 * (p * t)
            if gamma == 2.0:
                loss = ce * (m * m)           # explicit square, no float pow
            else:
                loss = ce * (m ** gamma)

            if alpha >= 0.0:                  # static branch (module semantics)
                # alpha_t == (1 - alpha) + (2*alpha - 1) * t  (constants folded)
                loss = ((1.0 - alpha) + (2.0 * alpha - 1.0) * t) * loss

            @pl.when(chunk_valid >= inner_rows)   # fast path: fully valid chunk
            def _():
                acc_ref[...] += fold(loss)

            @pl.when(chunk_valid < inner_rows)    # boundary chunk: row-level mask
            def _():
                lr = jax.lax.broadcasted_iota(jnp.int32, (inner_rows, _LANES), 0)
                acc_ref[...] += fold(jnp.where(lr < chunk_valid, loss, 0.0))

        return carry

    jax.lax.fori_loop(0, n_chunks, chunk_body, 0)

    @pl.when(i == pl.num_programs(1) - 1)
    def _():
        # Single sublane reduce per slice -> (1, 128) per-lane partial sums.
        out_ref[...] = jnp.sum(acc_ref[...], axis=0, keepdims=True)


def _focal_elementwise(x, t, alpha, gamma):
    """Plain-JAX per-element focal loss (used for the ragged tail + reference)."""
    x = x.astype(jnp.float32)
    t = t.astype(jnp.float32)
    ce = jnp.maximum(x, 0.0) - x * t + jnp.log1p(jnp.exp(-jnp.abs(x)))
    p = jax.nn.sigmoid(x)
    p_t = p * t + (1.0 - p) * (1.0 - t)
    loss = ce * (1.0 - p_t) ** gamma
    if alpha >= 0:
        loss = (alpha * t + (1.0 - alpha) * (1.0 - t)) * loss
    return loss


def focal_loss(classifications, targets, *, alpha=0.25, gamma=2.0, reduce="mean"):
    """Pallas TPU focal loss. Accepts arrays of any (matching) shape, returns f32 scalar."""
    assert classifications.shape == targets.shape
    if reduce not in ("mean", "sum"):
        raise ValueError("reduce type is wrong!")

    n = int(classifications.size)
    assert 0 < n < 2 ** 31

    xf = classifications.reshape(-1)
    tf = targets.reshape(-1)

    body_n = (n // (_SUBLANES * _LANES)) * (_SUBLANES * _LANES)

    total = jnp.zeros((), jnp.float32)
    if body_n < n:
        # <1024-element ragged tail: plain jnp (negligible), no pad copy of x/t.
        total = total + jnp.sum(_focal_elementwise(xf[body_n:], tf[body_n:], alpha, gamma))

    if body_n > 0:
        rows = body_n // _LANES                      # multiple of 8
        x2 = xf[:body_n].reshape(rows, _LANES)       # free when n is 1024-aligned
        t2 = tf[:body_n].reshape(rows, _LANES)

        num_partials = _num_tensorcores()
        vmem_cap = _vmem_capacity_bytes()

        # --- block-size selection (sized by real itemsize, capped by VMEM) ---
        itemsize = max(1, int(x2.dtype.itemsize))
        budget = min((vmem_cap * 3) // 4, 96 * 1024 * 1024)
        target_block_bytes = min(8 * 1024 * 1024, budget // 6)
        tile_rows = (target_block_bytes // (_LANES * itemsize)) // _SUBLANES * _SUBLANES
        tile_rows = max(_SUBLANES, min(tile_rows, _MAX_TILE_ROWS))
        # Give every TensorCore slice real rows (no all-padding slice on v7x).
        per_core_rows = _round_up(_ceil_div(rows, num_partials), _SUBLANES)
        tile_rows = min(tile_rows, per_core_rows)
        inner_rows = min(_INNER_ROWS, tile_rows)
        tile_rows = (tile_rows // inner_rows) * inner_rows

        blocks_total = _ceil_div(rows, tile_rows)
        blocks_per_partial = _ceil_div(blocks_total, num_partials)

        in_block_bytes = tile_rows * _LANES * (x2.dtype.itemsize + t2.dtype.itemsize)
        # 2 pipeline buffers per input block + live f32 chunk temporaries + headroom.
        footprint = 2 * in_block_bytes + 10 * inner_rows * _LANES * 4 + (4 << 20)
        vmem_limit = int(min(max(footprint, 16 << 20), vmem_cap))

        def in_index_map(c, i):
            # Clamp phantom block indices to the last real block; the kernel's
            # row mask (based on the unclamped index) zeroes their contribution.
            return (jnp.minimum(c * blocks_per_partial + i, blocks_total - 1), 0)

        kernel = functools.partial(
            _focal_loss_kernel,
            alpha=float(alpha), gamma=float(gamma), rows=rows,
            tile_rows=tile_rows, inner_rows=inner_rows,
            blocks_per_partial=blocks_per_partial)

        partials = pl.pallas_call(
            kernel,
            out_shape=jax.ShapeDtypeStruct((1, num_partials * _LANES), jnp.float32),
            grid_spec=pltpu.PrefetchScalarGridSpec(
                num_scalar_prefetch=0,
                grid=(num_partials, blocks_per_partial),
                in_specs=[
                    pl.BlockSpec((tile_rows, _LANES), in_index_map),
                    pl.BlockSpec((tile_rows, _LANES), in_index_map),
                ],
                out_specs=pl.BlockSpec((1, _LANES), lambda c, i: (0, c)),
                scratch_shapes=[pltpu.VMEM((_SUBLANES, _LANES), jnp.float32)],
            ),
            compiler_params=pltpu.CompilerParams(
                dimension_semantics=("parallel", "arbitrary"),
                vmem_limit_bytes=vmem_limit,
            ),
        )(x2, t2)

        total = total + jnp.sum(partials)

    if reduce == "mean":
        total = total / jnp.float32(n)
    return total


def _focal_loss_ref(classifications, targets, alpha=0.25, gamma=2.0, reduce="mean"):
    loss = _focal_elementwise(classifications, targets, alpha, gamma)
    return jnp.mean(loss) if reduce == "mean" else jnp.sum(loss)


if __name__ == "__main__":
    key = jax.random.PRNGKey(0)
    k1, k2, k3, k4 = jax.random.split(key, 4)

    # Small, module-like shape (dense per-pixel classification logits).
    shape = (2, 4, 16, 16)
    classifications = jax.random.normal(k1, shape, dtype=jnp.float32) * 2.0
    targets = (jax.random.uniform(k2, shape) > 0.5).astype(jnp.float32)

    # Tolerances relaxed slightly for the approximate EUP reciprocal in the sigmoid.
    loss = jax.block_until_ready(focal_loss(classifications, targets))
    ref = _focal_loss_ref(classifications, targets)
    assert jnp.allclose(loss, ref, rtol=5e-3, atol=1e-4), (loss, ref)

    loss_sum = jax.block_until_ready(focal_loss(classifications, targets, reduce="sum"))
    ref_sum = _focal_loss_ref(classifications, targets, reduce="sum")
    assert jnp.allclose(loss_sum, ref_sum, rtol=5e-3, atol=1e-3), (loss_sum, ref_sum)

    # Non-1024-aligned size exercises the kernel body + plain-jnp tail path.
    odd_shape = (5, 16, 17)
    x_odd = jax.random.normal(k3, odd_shape, dtype=jnp.float32) * 2.0
    t_odd = (jax.random.uniform(k4, odd_shape) > 0.5).astype(jnp.float32)
    loss_odd = jax.block_until_ready(focal_loss(x_odd, t_odd))
    ref_odd = _focal_loss_ref(x_odd, t_odd)
    assert jnp.allclose(loss_odd, ref_odd, rtol=5e-3, atol=1e-4), (loss_odd, ref_odd)

    print("KERNEL_OK")
</pallas_src>

<mosaic_0001>
module attributes {stable_mosaic.version = 11 : i64} {
  func.func @_focal_loss_kernel(%arg0: i32, %arg1: i32, %arg2: memref<16x128xf32, #tpu.memory_space<vmem>>, %arg3: memref<16x128xf32, #tpu.memory_space<vmem>>, %arg4: memref<1x128xf32, #tpu.memory_space<vmem>>, %arg5: memref<8x128xf32, #tpu.memory_space<vmem>>) attributes {dimension_semantics = [#tpu.dimension_semantics<parallel>, #tpu.dimension_semantics<arbitrary>], iteration_bounds = array<i64: 1, 1>, scalar_prefetch = 0 : i64, scratch_operands = 1 : i64, tpu.core_type = #tpu.core_type<tc>, window_params = [{transform_indices = @transform_0, window_bounds = array<i64: 16, 128>}, {transform_indices = @transform_1, window_bounds = array<i64: 16, 128>}, {transform_indices = @transform_2, window_bounds = array<i64: 1, 128>}]} {
    %c0_i32 = arith.constant 0 : i32
    %0 = arith.cmpi eq, %arg1, %c0_i32 : i32
    %1 = arith.extui %0 : i1 to i32
    %c0_i32_0 = arith.constant 0 : i32
    %2 = arith.cmpi ne, %1, %c0_i32_0 : i32
    scf.if %2 {
      %cst = arith.constant 0.000000e+00 : f32
      %16 = vector.broadcast %cst : f32 to vector<8x128xf32>
      %c0 = arith.constant 0 : index
      %c0_9 = arith.constant 0 : index
      %17 = vector.load %arg5[%c0, %c0_9] : memref<8x128xf32, #tpu.memory_space<vmem>>, vector<8x128xf32>
      tpu.vector_store %arg5[%c0, %c0_9], %16 {strides = array<i32>} : memref<8x128xf32, #tpu.memory_space<vmem>>, vector<8x128xf32>,
    } else {
    }
    %c1_i32 = arith.constant 1 : i32
    %3 = arith.muli %arg0, %c1_i32 : i32
    %4 = arith.addi %3, %arg1 : i32
    %c16_i32 = arith.constant 16 : i32
    %5 = arith.muli %4, %c16_i32 : i32
    %c16_i32_1 = arith.constant 16 : i32
    %6 = arith.subi %c16_i32_1, %5 : i32
    %c0_i32_2 = arith.constant 0 : i32
    %c16_i32_3 = arith.constant 16 : i32
    %7 = arith.muli %c0_i32_2, %c16_i32_3 : i32
    %8 = tpu.assume_multiple %7, 16 : i32
    %9 = arith.subi %6, %8 : i32
    %c0_i32_4 = arith.constant 0 : i32
    %10 = arith.cmpi sgt, %9, %c0_i32_4 : i32
    %11 = arith.extui %10 : i1 to i32
    %c0_i32_5 = arith.constant 0 : i32
    %12 = arith.cmpi ne, %11, %c0_i32_5 : i32
    scf.if %12 {
      %16 = arith.index_cast %8 : i32 to index
      %c0 = arith.constant 0 : index
      %17 = vector.load %arg2[%16, %c0] : memref<16x128xf32, #tpu.memory_space<vmem>>, vector<16x128xf32>
      %18 = arith.index_cast %8 : i32 to index
      %c0_9 = arith.constant 0 : index
      %19 = vector.load %arg3[%18, %c0_9] : memref<16x128xf32, #tpu.memory_space<vmem>>, vector<16x128xf32>
      %20 = math.absf %17 : vector<16x128xf32>
      %cst = arith.constant 0.000000e+00 : f32
      %21 = vector.broadcast %cst : f32 to vector<16x128xf32>
      %22 = arith.subf %21, %20 : vector<16x128xf32>
      %23 = math.exp %22 : vector<16x128xf32>
      %cst_10 = arith.constant 0.000000e+00 : f32
      %24 = vector.broadcast %cst_10 : f32 to vector<16x128xf32>
      %25 = arith.maximumf %17, %24 : vector<16x128xf32>
      %26 = arith.mulf %17, %19 : vector<16x128xf32>
      %27 = arith.subf %25, %26 : vector<16x128xf32>
      %28 = math.log1p %23 : vector<16x128xf32>
      %29 = arith.addf %27, %28 : vector<16x128xf32>
      %cst_11 = arith.constant 1.000000e+00 : f32
      %30 = vector.broadcast %cst_11 : f32 to vector<16x128xf32>
      %31 = arith.addf %30, %23 : vector<16x128xf32>
      %32 = tpu.reciprocal %31 {approx = true} : vector<16x128xf32> -> vector<16x128xf32>
      %cst_12 = arith.constant 0.000000e+00 : f32
      %33 = vector.broadcast %cst_12 : f32 to vector<16x128xf32>
      %34 = arith.cmpf oge, %17, %33 : vector<16x128xf32>
      %35 = arith.mulf %23, %32 : vector<16x128xf32>
      %36 = arith.select %34, %32, %35 : vector<16x128xi1>, vector<16x128xf32>
      %37 = arith.addf %36, %19 : vector<16x128xf32>
      %38 = arith.mulf %36, %19 : vector<16x128xf32>
      %cst_13 = arith.constant 2.000000e+00 : f32
      %39 = vector.broadcast %cst_13 : f32 to vector<16x128xf32>
      %40 = arith.mulf %39, %38 : vector<16x128xf32>
      %41 = arith.subf %37, %40 : vector<16x128xf32>
      %42 = arith.mulf %41, %41 : vector<16x128xf32>
      %43 = arith.mulf %29, %42 : vector<16x128xf32>
      %cst_14 = arith.constant -5.000000e-01 : f32
      %44 = vector.broadcast %cst_14 : f32 to vector<16x128xf32>
      %45 = arith.mulf %44, %19 : vector<16x128xf32>
      %cst_15 = arith.constant 7.500000e-01 : f32
      %46 = vector.broadcast %cst_15 : f32 to vector<16x128xf32>
      %47 = arith.addf %46, %45 : vector<16x128xf32>
      %48 = arith.mulf %47, %43 : vector<16x128xf32>
      %c16_i32_16 = arith.constant 16 : i32
      %49 = arith.cmpi sge, %9, %c16_i32_16 : i32
      %50 = arith.extui %49 : i1 to i32
      %c0_i32_17 = arith.constant 0 : i32
      %51 = arith.cmpi ne, %50, %c0_i32_17 : i32
      scf.if %51 {
        %c0_20 = arith.constant 0 : index
        %c0_21 = arith.constant 0 : index
        %55 = vector.load %arg5[%c0_20, %c0_21] : memref<8x128xf32, #tpu.memory_space<vmem>>, vector<8x128xf32>
        %56 = vector.extract_strided_slice %48 {offsets = [0, 0], sizes = [8, 128], strides = [1, 1]} : vector<16x128xf32> to vector<8x128xf32>
        %57 = vector.extract_strided_slice %48 {offsets = [8, 0], sizes = [8, 128], strides = [1, 1]} : vector<16x128xf32> to vector<8x128xf32>
        %58 = arith.addf %56, %57 : vector<8x128xf32>
        %59 = arith.addf %55, %58 : vector<8x128xf32>
        %c0_22 = arith.constant 0 : index
        %c0_23 = arith.constant 0 : index
        %60 = vector.load %arg5[%c0_22, %c0_23] : memref<8x128xf32, #tpu.memory_space<vmem>>, vector<8x128xf32>
        tpu.vector_store %arg5[%c0_22, %c0_23], %59 {strides = array<i32>} : memref<8x128xf32, #tpu.memory_space<vmem>>, vector<8x128xf32>,
      } else {
      }
      %c16_i32_18 = arith.constant 16 : i32
      %52 = arith.cmpi slt, %9, %c16_i32_18 : i32
      %53 = arith.extui %52 : i1 to i32
      %c0_i32_19 = arith.constant 0 : i32
      %54 = arith.cmpi ne, %53, %c0_i32_19 : i32
      scf.if %54 {
        %55 = tpu.iota {dimensions = array<i32: 0>} : vector<16x128xi32>
        %c0_20 = arith.constant 0 : index
        %c0_21 = arith.constant 0 : index
        %56 = vector.load %arg5[%c0_20, %c0_21] : memref<8x128xf32, #tpu.memory_space<vmem>>, vector<8x128xf32>
        %57 = vector.broadcast %9 : i32 to vector<16x128xi32>
        %58 = arith.cmpi slt, %55, %57 : vector<16x128xi32>
        %cst_22 = arith.constant 0.000000e+00 : f32
        %59 = vector.broadcast %cst_22 : f32 to vector<16x128xf32>
        %60 = arith.select %58, %48, %59 : vector<16x128xi1>, vector<16x128xf32>
        %61 = vector.extract_strided_slice %60 {offsets = [0, 0], sizes = [8, 128], strides = [1, 1]} : vector<16x128xf32> to vector<8x128xf32>
        %62 = vector.extract_strided_slice %60 {offsets = [8, 0], sizes = [8, 128], strides = [1, 1]} : vector<16x128xf32> to vector<8x128xf32>
        %63 = arith.addf %61, %62 : vector<8x128xf32>
        %64 = arith.addf %56, %63 : vector<8x128xf32>
        %c0_23 = arith.constant 0 : index
        %c0_24 = arith.constant 0 : index
        %65 = vector.load %arg5[%c0_23, %c0_24] : memref<8x128xf32, #tpu.memory_space<vmem>>, vector<8x128xf32>
        tpu.vector_store %arg5[%c0_23, %c0_24], %64 {strides = array<i32>} : memref<8x128xf32, #tpu.memory_space<vmem>>, vector<8x128xf32>,
      } else {
      }
    } else {
    }
    %c1_i32_6 = arith.constant 1 : i32
    %c0_i32_7 = arith.constant 0 : i32
    %13 = arith.cmpi eq, %arg1, %c0_i32_7 : i32
    %14 = arith.extui %13 : i1 to i32
    %c0_i32_8 = arith.constant 0 : i32
    %15 = arith.cmpi ne, %14, %c0_i32_8 : i32
    scf.if %15 {
      %c0 = arith.constant 0 : index
      %c0_9 = arith.constant 0 : index
      %16 = vector.load %arg5[%c0, %c0_9] : memref<8x128xf32, #tpu.memory_space<vmem>>, vector<8x128xf32>
      %cst = arith.constant dense<0.000000e+00> : vector<128xf32>
      %17 = vector.multi_reduction <add>, %16, %cst [0] : vector<8x128xf32> to vector<128xf32>
      %18 = vector.shape_cast %17 : vector<128xf32> to vector<1x128xf32>
      %c0_10 = arith.constant 0 : index
      %c0_11 = arith.constant 0 : index
      %19 = vector.load %arg4[%c0_10, %c0_11] : memref<1x128xf32, #tpu.memory_space<vmem>>, vector<1x128xf32>
      tpu.vector_store %arg4[%c0_10, %c0_11], %18 {strides = array<i32>} : memref<1x128xf32, #tpu.memory_space<vmem>>, vector<1x128xf32>,
    } else {
    }
    return
  }
  func.func @transform_0(%arg0: i32, %arg1: i32) -> (i32, i32) {
    %c1_i32 = arith.constant 1 : i32
    %0 = arith.muli %arg0, %c1_i32 : i32
    %1 = arith.addi %0, %arg1 : i32
    %c0_i32 = arith.constant 0 : i32
    %2 = arith.minsi %1, %c0_i32 : i32
    %c0_i32_0 = arith.constant 0 : i32
    %c0_i32_1 = arith.constant 0 : i32
    return %2, %c0_i32_0 : i32, i32
  }
  func.func @transform_1(%arg0: i32, %arg1: i32) -> (i32, i32) {
    %c1_i32 = arith.constant 1 : i32
    %0 = arith.muli %arg0, %c1_i32 : i32
    %1 = arith.addi %0, %arg1 : i32
    %c0_i32 = arith.constant 0 : i32
    %2 = arith.minsi %1, %c0_i32 : i32
    %c0_i32_0 = arith.constant 0 : i32
    %c0_i32_1 = arith.constant 0 : i32
    return %2, %c0_i32_0 : i32, i32
  }
  func.func @transform_2(%arg0: i32, %arg1: i32) -> (i32, i32) {
    %c0_i32 = arith.constant 0 : i32
    %c0_i32_0 = arith.constant 0 : i32
    return %c0_i32, %arg0 : i32, i32
  }
}

</mosaic_0001>

<bundles_post_ra>
// kernel: tpu_custom_call.1
= control target key start
LH: loop header
LB: loop body
LE: loop exit
PB: predicated region body
PF: predicated region fallthrough
CT: control target
= control target key end

     0   :  { %7 = vsyncpa [#allocation4], 0  ;;  %s318_s0 = inlined_call_operand.hbm [shape: f32[16,128], index: 0, kind: input, shape index: {}]   ;;  %s319_s1 = inlined_call_operand.hbm [shape: f32[16,128], index: 1, kind: input, shape index: {}]   ;;  %s320_s2 = inlined_call_operand.hbm [shape: f32[1,128], index: 2, kind: output, shape index: {}]  }
   0x1   :  { %8 = vsyncpa [#allocation7], 0 }
   0x2   :  { %9 = vsyncpa [#allocation5], 0  ;;  %s277_s9 = smov [#allocation3]  }
   0x3   :  { %s21_s10 = sshll.u32 %s277_s9, 4  ;;  %s22_s10 = int_to_ptr.vmem [resolvable:$true] %s21_s10 }
   0x4   :  { %s219_s11 = scalar_lea.vmem %s22_s10, 256  ;;  %p224_p1 = scmp.lt.s32.totalorder %s22_s10, %s22_s10 }
   0x5   :  { %p220_p0 = scmp.ne.s32.totalorder %s22_s10, %s219_s11  ;;  %p225_p2 = scmp.lt.s32.totalorder %s219_s11, %s219_s11 }
   0x7   :  { %p226_p3 = por %p225_p2, %p224_p1 }
   0x9   :  { %p227_p4 = pnand %p226_p3, %p220_p0 }
   0xb   :  { %230 = shalt.err (!%p227_p4)
}
   0xc   :  { %s278_s12 = smov 128   ;;  %s279_s13 = smov 8  }
   0xd   :  { %27 = dma.hbm_to_vmem [thread:$0]  %s318_s0, 256, %s22_s10, [#allocation4], %s278_s12, %s278_s12, %s279_s13  }
   0xe   :  { %s280_s16 = smov [#allocation6]  }
   0xf   :  { %s39_s17 = sshll.u32 %s280_s16, 4  ;;  %s40_s17 = int_to_ptr.vmem [resolvable:$true] %s39_s17 }
  0x10   :  { %s239_s18 = scalar_lea.vmem %s40_s17, 256  ;;  %p244_p6 = scmp.lt.s32.totalorder %s40_s17, %s40_s17 }
  0x11   :  { %p240_p5 = scmp.ne.s32.totalorder %s40_s17, %s239_s18  ;;  %p245_p7 = scmp.lt.s32.totalorder %s239_s18, %s239_s18 }
  0x13   :  { %p246_p8 = por %p245_p7, %p244_p6 }
  0x15   :  { %p247_p9 = pnand %p246_p8, %p240_p5 }
  0x17   :  { %250 = shalt.err (!%p247_p9)
}
  0x18   :  { %45 = dma.hbm_to_vmem [thread:$0]  %s319_s1, 256, %s40_s17, [#allocation7], %s278_s12, %s278_s12, %s279_s13  }
  0x19   :  { %271 = dma.done.wait [#allocation4], 256  }
  0x1a   :  { %272 = vsyncadd [#allocation4], 4294967040 }
  0x1b   :  { %273 = dma.done.wait [#allocation7], 256  }
  0x1c   :  { %274 = vsyncadd [#allocation7], 4294967040  ;;  %v73_v0 = vld [vmem:[#allocation3] sm:$0xff]  ;;  %v74_v1 = vld [vmem:[#allocation3 + $0x8] sm:$0xff]  ;;  %s281_s0 = smov [#allocation8]  }
  0x1d   :  { %v77_v2 = vand.u32 2147483647, %v73_v0  ;;  %v78_v3 = vand.u32 2147483647, %v74_v1  ;;  %v75_v19 = vld [vmem:[#allocation6] sm:$0xff]  ;;  %v76_v20 = vld [vmem:[#allocation6 + $0x8] sm:$0xff] }
  0x1e   :  { %v85_v21 = vmax.f32 %v73_v0, 0.0  ;;  %v86_v24 = vmax.f32 %v74_v1, 0.0  ;;  %v87_v25 = vmul.f32 %v75_v19, %v73_v0  ;;  %v88_v26 = vmul.f32 %v76_v20, %v74_v1  ;;  %s180_s1 = sshll.u32 %s281_s0, 4  ;;  %s181_s1 = int_to_ptr.vmem [resolvable:$true] %s180_s1 }
  0x1f   :  { %v79_v4 = vsub.f32 0.0, %v77_v2  ;;  %v80_v5 = vsub.f32 0.0, %v78_v3  ;;  %vm115_vm0 = vcmp.ge.f32.partialorder %v73_v0, 0.0  ;;  %vm116_vm1 = vcmp.ge.f32.partialorder %v74_v1, 0.0  ;;  %s251_s21 = scalar_lea.vmem %s181_s1, 16  ;;  %s255_s22 = scalar_lea.vmem %s181_s1, 32 }
  0x20   :  { %v89_v37 = vsub.f32 %v85_v21, %v87_v25  ;;  %v90_v41 = vsub.f32 %v86_v24, %v88_v26  ;;  %v133_v47 = vmul.f32 -0.5, %v75_v19  ;;  %v134_v49 = vmul.f32 -0.5, %v76_v20  ;;  %p252_p10 = scmp.ne.s32.totalorder %s181_s1, %s251_s21  ;;  %p256_p11 = scmp.lt.s32.totalorder %s181_s1, %s181_s1 }
  0x21   :  { %v81_v6 = vmul.f32 1.442695, %v79_v4  ;;  %v83_v7 = vmul.f32 1.442695, %v80_v5  ;;  %p257_p12 = scmp.lt.s32.totalorder %s255_s22, %s251_s21 }
  0x22   :  { %v135_v55 = vadd.f32 0.75, %v133_v47  ;;  %v136_v57 = vadd.f32 0.75, %v134_v49 }
  0x23   :  { %199 = vpow2.f32 %v81_v6  ;;  %p258_p13 = por %p257_p12, %p256_p11 }
  0x24   :  { %201 = vpow2.f32 %v83_v7 }
  0x25   :  { %p259_p0 = pnand %p258_p13, %p252_p10 }
  0x30   :  { %v200_v8 = vpop.eup %199 }
  0x31   :  { %v202_v9 = vpop.eup %201  ;;  %v91_v10 = vadd.f32 1.0, %v200_v8  ;;  %v94_v12 = vmul.f32 -0.5, %v200_v8  ;;  %v97_v16 = vand.u32 2147483647, %v200_v8 }
  0x32   :  { %v100_v11 = vadd.f32 1.0, %v202_v9  ;;  %v103_v13 = vmul.f32 -0.5, %v202_v9  ;;  %v106_v22 = vand.u32 2147483647, %v202_v9 }
  0x33   :  { %203 = vlog2.f32 %v91_v10  ;;  %v95_v14 = vadd.f32 1.0, %v94_v12  ;;  %vm303_vm2 = vcmp.lt.f32.partialorder %v97_v16, 0.0004427343 }
  0x34   :  { %205 = vlog2.f32 %v100_v11  ;;  %v104_v17 = vadd.f32 1.0, %v103_v13  ;;  %vm307_vm3 = vcmp.lt.f32.partialorder %v106_v22, 0.0004427343 }
  0x35   :  { %207 = vrcp.f32 %v91_v10  ;;  %v96_v29 = vmul.f32 %v200_v8, %v95_v14 }
  0x36   :  { %209 = vrcp.f32 %v100_v11  ;;  %v105_v33 = vmul.f32 %v202_v9, %v104_v17 }
  0x40   :  { %v204_v15 = vpop.eup %203 }
  0x41   :  { %v206_v18 = vpop.eup %205  ;;  %v93_v28 = vmul.f32 0.6931472, %v204_v15 }
  0x42   :  { %v208_v23 = vpop.eup %207  ;;  %v102_v32 = vmul.f32 0.6931472, %v206_v18 }
  0x43   :  { %v210_v27 = vpop.eup %209  ;;  %v117_v30 = vmul.f32 %v208_v23, %v200_v8  ;;  %v99_v42 = vsel %vm303_vm2, %v96_v29, %v93_v28 }
  0x44   :  { %v118_v34 = vmul.f32 %v210_v27, %v202_v9  ;;  %v108_v45 = vsel %vm307_vm3, %v105_v33, %v102_v32  ;;  %v109_v50 = vadd.f32 %v99_v42, %v89_v37 }
  0x45   :  { %v119_v36 = vsel %vm115_vm0, %v208_v23, %v117_v30  ;;  %v110_v52 = vadd.f32 %v108_v45, %v90_v41 }
  0x46   :  { %v120_v38 = vsel %vm116_vm1, %v210_v27, %v118_v34  ;;  %v121_v39 = vadd.f32 %v119_v36, %v75_v19  ;;  %v123_v40 = vmul.f32 %v119_v36, %v75_v19 }
  0x47   :  { %v122_v43 = vadd.f32 %v120_v38, %v76_v20  ;;  %v124_v44 = vmul.f32 %v120_v38, %v76_v20 }
  0x48   :  { %v125_v46 = vmul.f32 2.0, %v123_v40 }
  0x49   :  { %v126_v48 = vmul.f32 2.0, %v124_v44 }
  0x4a   :  { %v127_v51 = vsub.f32 %v121_v39, %v125_v46 }
  0x4b   :  { %v128_v53 = vsub.f32 %v122_v43, %v126_v48 }
  0x4c   :  { %v129_v54 = vmul.f32 %v127_v51, %v127_v51 }
  0x4d   :  { %v130_v56 = vmul.f32 %v128_v53, %v128_v53 }
  0x4e   :  { %v131_v58 = vmul.f32 %v129_v54, %v109_v50 }
  0x4f   :  { %v132_v59 = vmul.f32 %v130_v56, %v110_v52 }
  0x50   :  { %v137_v60 = vmul.f32 %v135_v55, %v131_v58 }
  0x51   :  { %v138_v61 = vmul.f32 %v136_v57, %v132_v59 }
  0x53   :  { %v144_v62 = vadd.f32 %v138_v61, %v137_v60 }
  0x55   :  { %v167_v63 = vrot.slane %v144_v62, 4 }
  0x57   :  { %v168_v0 = vadd.f32 %v167_v63, %v144_v62 }
  0x59   :  { %v169_v1 = vrot.slane %v168_v0, 2 }
  0x5b   :  { %v170_v2 = vadd.f32 %v169_v1, %v168_v0 }
  0x5d   :  { %v171_v3 = vrot.slane %v170_v2, 1 }
  0x5f   :  { %v172_v4 = vadd.f32 %v171_v3, %v170_v2 }
  0x61   :  { %173 = vst [vmem:[#allocation8] sm:$0x1] %v172_v4 }
  0x62   :  { %262 = shalt.err (!%p259_p0)
}
  0x63   :  { %183 = dma.vmem_to_hbm [thread:$0]  %s181_s1, 16, %s320_s2, [#allocation5]  }
  0x64   :  { %275 = dma.done.wait [#allocation5], 16  }
  0x65   :  { %276 = vsyncadd [#allocation5], 4294967280 }
  0x66   :  { %187 = vsyncpa [#allocation4], 1 }
  0x67   :  { %188 = vsyncpa [#allocation7], 1 }
  0x68   :  { %189 = vsyncpa [#allocation5], 1 }

</bundles_post_ra>
